<compile_context>
chip_gen: v6e
topology: v6e:2x2x1
jax: 0.10.0
libtpu: 0.0.40
codegen_flags: <defaults>
</compile_context>

<pallas_src>
import functools
import math

import jax
import jax.numpy as jnp
from jax.experimental import pallas as pl
from jax.experimental.pallas import tpu as pltpu

# The module hard-codes self.q = Parameter(torch.ones(1, 1, 512)), which forces
# d_model == 512 for the matmul inside Attention to be valid.
D_MODEL = 512


def attention_sum_kernel(consts_ref, wcomb_ref, x_ref, o_ref, *, eps, approx_recip):
    """One batch tile: (BT, S, D) -> (BT, D).

    consts_ref: (8, D) f32 packed constants; row 0 = qk = (q/sqrt(D)) @ Wk,
                row 1 = LayerNorm gamma, row 2 = LayerNorm beta.
    wcomb_ref : (D, D) fused value/fc weight, Wcomb = Wv^T @ Wfc^T.
    x_ref     : (BT, S, D) input tile, streamed at its native dtype.
    """
    # Upcast once to f32 for VPU/softmax/LN math (exact vs. the f32 PyTorch
    # reference).  Callers may pass bf16 x to halve HBM traffic; the upcast then
    # happens here, in VMEM, not as a separate HBM pass.
    x_f = x_ref[...].astype(jnp.float32)                        # (BT, S, D)
    qk = consts_ref[0:1, :][None]                               # (1, 1, D)
    gamma = consts_ref[1:2, :]                                  # (1, D)
    beta = consts_ref[2:3, :]                                   # (1, D)

    # scores[b, s] = x[b, s, :] . qk   (VPU mul + lane reduce)
    scores = jnp.sum(x_f * qk, axis=-1, keepdims=True)          # (BT, S, 1)
    scores = scores - jnp.max(scores, axis=1, keepdims=True)
    e = jnp.exp(scores)                                         # (BT, S, 1)
    denom = jnp.sum(e, axis=1)                                  # (BT, 1)
    # attention dropout: eval mode -> identity

    # Deferred softmax normalization: accumulate the UNnormalized weighted sum
    # over S, then scale the (BT, D) result by 1/denom (EUP reciprocal + one
    # lane-dense multiply) instead of dividing the (BT, S, 1) tensor.
    ctx = jnp.sum(e * x_f, axis=1)                              # (BT, D)
    ctx = ctx * pl.reciprocal(denom, approx=approx_recip)       # (BT, D) * (BT, 1)
    # TODO(synk): for very large S, use a lane-dense (BT, S) softmax layout and a
    # second "arbitrary" grid axis over S with an online softmax so BT stays large.

    # Fused value-projection + fc: (BT, D) @ (D, D) on the MXU, f32 accumulation.
    out = jnp.dot(ctx.astype(wcomb_ref.dtype), wcomb_ref[...],
                  preferred_element_type=jnp.float32)           # (BT, D)
    # dropout after fc: eval mode -> identity

    # LayerNorm over the model dim (biased variance, eps inside the sqrt).
    mean = jnp.mean(out, axis=-1, keepdims=True)
    var = jnp.mean((out - mean) ** 2, axis=-1, keepdims=True)
    y = (out - mean) * jax.lax.rsqrt(var + eps)
    o_ref[...] = (y * gamma + beta).astype(o_ref.dtype)


def prepare_attention_sum_params(q_param, wk, wv, wfc, gamma, beta,
                                 compute_dtype=jnp.bfloat16):
    """One-time parameter preparation (call at setup time, NOT per forward)."""
    D = wk.shape[0]
    assert D == D_MODEL, "module hard-codes q as (1,1,512) -> d_model must be 512"
    temp = float(D) ** 0.5
    # scores[b,s] = ((q/temp) @ Wk) . x[b,s]
    qk = (q_param.reshape(1, D).astype(jnp.float32) / temp) @ wk.astype(jnp.float32)
    # out = (attn @ x) @ Wv^T @ Wfc^T == (attn @ x) @ Wcomb
    wcomb = (wv.T.astype(jnp.float32) @ wfc.T.astype(jnp.float32)).astype(compute_dtype)
    # Pack the three tiny per-lane constants into one (8, D) block: a single
    # constant DMA instead of three separately padded (1, D) -> (8,128)-tile DMAs.
    consts = jnp.zeros((8, D), jnp.float32)
    consts = consts.at[0].set(qk.reshape(D))
    consts = consts.at[1].set(gamma.reshape(D).astype(jnp.float32))
    consts = consts.at[2].set(beta.reshape(D).astype(jnp.float32))
    return {"consts": consts, "wcomb": wcomb}


def _vmem_budget():
    """(tile-sizing budget bytes, scoped vmem_limit_bytes) for this chip."""
    try:
        cap = int(pltpu.get_tpu_info().vmem_capacity_bytes)
    except Exception:
        cap = 64 << 20                       # conservative fallback: v7x-sized VMEM
    budget = (cap * 3) // 4                  # ~48 MiB on v7x, ~96 MiB on v5e/v6e
    limit = min(cap - (4 << 20), budget + (16 << 20))
    return budget, limit


def attention_sum(x, params, *, max_b_tile=None, approx_recip=True):
    """Forward pass: x (B, S, D) -> (B, D).

    x is streamed at its native dtype (no wrapper-side astype/pad passes over x);
    pass bf16 x from the producer to halve HBM traffic.
    """
    B, S, D = x.shape
    assert D == D_MODEL, "module hard-codes q as (1,1,512) -> d_model must be 512"
    consts, wcomb = params["consts"], params["wcomb"]

    # ---- VMEM-aware batch-tile selection -------------------------------------
    budget, vmem_limit = _vmem_budget()
    xb = jnp.dtype(x.dtype).itemsize
    wb = jnp.dtype(wcomb.dtype).itemsize
    # Per batch row: double-buffered x block + ~2x f32 in-kernel temporaries
    # (f32 upcast + the e*x product) + double-buffered output block.
    per_row = 2 * S * D * xb + 2 * S * D * 4 + 2 * D * 4
    fixed = 2 * D * D * wb + 2 * 8 * D * 4 + (2 << 20)   # Wcomb/consts buffers + slack
    avail = max(budget - fixed, 8 * per_row)
    b_tile = max(8, (avail // per_row) // 8 * 8)
    b_tile = min(b_tile, 512)                            # MXU M saturates well below this
    if max_b_tile is not None:
        b_tile = min(b_tile, max(8, (max_b_tile // 8) * 8))
    if B >= 16:
        # Keep >= 2 grid steps so both v7x TensorCores get work on the "parallel" axis.
        b_tile = min(b_tile, ((-(-B // 2)) + 7) // 8 * 8)
    if B < 8:
        b_tile = B                                       # single tiny tile; block == full dim
    else:
        b_tile = min(b_tile, ((B + 7) // 8) * 8)         # keep (8,128)-aligned output slabs

    n_steps = -(-B // b_tile)
    b_pad = n_steps * b_tile   # pad ONLY the small (B, D) output; x is never copied/padded.
    # TODO(synk): for very large S (one batch row >> VMEM budget) add an S grid
    # axis with an online softmax instead of letting b_tile collapse to 8.

    out = pl.pallas_call(
        functools.partial(attention_sum_kernel, eps=1e-6, approx_recip=approx_recip),
        out_shape=jax.ShapeDtypeStruct((b_pad, D), x.dtype),
        grid_spec=pltpu.PrefetchScalarGridSpec(
            num_scalar_prefetch=0,
            grid=(n_steps,),
            in_specs=[
                pl.BlockSpec((8, D), lambda b: (0, 0)),              # packed qk/gamma/beta
                pl.BlockSpec((D, D), lambda b: (0, 0)),              # Wcomb (constant)
                pl.BlockSpec((b_tile, S, D), lambda b: (b, 0, 0)),   # x tile (ragged last block OK)
            ],
            out_specs=pl.BlockSpec((b_tile, D), lambda b: (b, 0)),   # dense, aligned slab
        ),
        compiler_params=pltpu.CompilerParams(
            dimension_semantics=("parallel",),
            vmem_limit_bytes=int(vmem_limit)),
    )(consts, wcomb, x)

    # Attention output seq-len is 1, so q.view(-1, d_model) == (B, D).
    return out if b_pad == B else out[:B]


def attention_sum_reference(x, q_param, wk, wv, wfc, gamma, beta):
    """Pure-JAX reference mirroring the PyTorch forward (eval mode, f32)."""
    x = x.astype(jnp.float32)
    B, S, D = x.shape
    temp = float(D) ** 0.5
    k = x @ wk.T
    v = x @ wv.T
    attn = jnp.matmul(q_param / temp, jnp.swapaxes(k, 1, 2))   # (B, 1, S)
    attn = jax.nn.softmax(attn, axis=-1)
    ctx = jnp.matmul(attn, v)                                  # (B, 1, D)
    out = ctx @ wfc.T
    mean = jnp.mean(out, axis=-1, keepdims=True)
    var = jnp.mean((out - mean) ** 2, axis=-1, keepdims=True)
    y = (out - mean) / jnp.sqrt(var + 1e-6) * gamma + beta
    return y.reshape(-1, D)


if __name__ == "__main__":
    key = jax.random.PRNGKey(0)
    D = D_MODEL
    k1, k2, k3, k4, k5 = jax.random.split(key, 5)

    # Deterministic parameters (shapes from __init__), eval mode.
    q_param = jnp.ones((1, 1, 512), jnp.float32)                # torch.ones init
    bound = 1.0 / math.sqrt(D)                                  # nn.Linear default init
    wk = jax.random.uniform(k2, (D, D), jnp.float32, -bound, bound)
    wv = jax.random.uniform(k3, (D, D), jnp.float32, -bound, bound)
    wfc = jax.random.uniform(k4, (D, D), jnp.float32, -bound, bound)
    gamma = jnp.ones((D,), jnp.float32)                         # LayerNorm weight
    beta = jnp.zeros((D,), jnp.float32)                         # LayerNorm bias

    # --- case 1: small batch (B < 8), strict f32 path vs reference ---
    B, S = 2, 8
    x = jax.random.normal(k1, (B, S, D), jnp.float32)
    p_f32 = prepare_attention_sum_params(q_param, wk, wv, wfc, gamma, beta,
                                         compute_dtype=jnp.float32)
    out_f32 = jax.block_until_ready(attention_sum(x, p_f32, approx_recip=False))
    ref = attention_sum_reference(x, q_param, wk, wv, wfc, gamma, beta)
    assert out_f32.shape == (B, D)
    assert jnp.allclose(out_f32, ref, rtol=1e-4, atol=1e-4), "f32 path mismatch"

    # --- case 2: bf16 MXU operand + approx reciprocal (v6e/v7x fast path) ---
    p_bf16 = prepare_attention_sum_params(q_param, wk, wv, wfc, gamma, beta,
                                          compute_dtype=jnp.bfloat16)
    out_bf16 = jax.block_until_ready(attention_sum(x, p_bf16))
    assert jnp.allclose(out_bf16, ref, rtol=1e-1, atol=1e-1), "bf16 path mismatch"

    # --- case 3: multi-step grid + ragged last x block (B=20, auto tiling) ---
    B3 = 20
    x3 = jax.random.normal(k5, (B3, S, D), jnp.float32)
    out3 = jax.block_until_ready(attention_sum(x3, p_f32, approx_recip=False))
    ref3 = attention_sum_reference(x3, q_param, wk, wv, wfc, gamma, beta)
    assert out3.shape == (B3, D)
    assert jnp.allclose(out3, ref3, rtol=1e-4, atol=1e-4), "auto-tiled path mismatch"

    # --- case 4: forced small tile -> 3 grid steps + padded-output slice ---
    out4 = jax.block_until_ready(attention_sum(x3, p_f32, max_b_tile=8,
                                               approx_recip=False))
    assert jnp.allclose(out4, ref3, rtol=1e-4, atol=1e-4), "small-tile path mismatch"

    print("KERNEL_OK")
</pallas_src>

<mosaic_0001>
module attributes {stable_mosaic.version = 11 : i64} {
  func.func @attention_sum_kernel(%arg0: i32, %arg1: memref<8x512xf32, #tpu.memory_space<vmem>>, %arg2: memref<512x512xf32, #tpu.memory_space<vmem>>, %arg3: memref<2x8x512xf32, #tpu.memory_space<vmem>>, %arg4: memref<2x512xf32, #tpu.memory_space<vmem>>) attributes {dimension_semantics = [#tpu.dimension_semantics<parallel>], iteration_bounds = array<i64: 1>, scalar_prefetch = 0 : i64, scratch_operands = 0 : i64, tpu.core_type = #tpu.core_type<tc>, window_params = [{pipeline_mode = #tpu.pipeline_mode<synchronous>, transform_indices = @transform_0, window_bounds = array<i64: 8, 512>}, {pipeline_mode = #tpu.pipeline_mode<synchronous>, transform_indices = @transform_1, window_bounds = array<i64: 512, 512>}, {transform_indices = @transform_2, window_bounds = array<i64: 2, 8, 512>}, {transform_indices = @transform_3, window_bounds = array<i64: 2, 512>}]} {
    %c0 = arith.constant 0 : index
    %c0_0 = arith.constant 0 : index
    %c0_1 = arith.constant 0 : index
    %0 = vector.load %arg3[%c0, %c0_0, %c0_1] : memref<2x8x512xf32, #tpu.memory_space<vmem>>, vector<2x8x512xf32>
    %c0_2 = arith.constant 0 : index
    %c0_3 = arith.constant 0 : index
    %1 = vector.load %arg1[%c0_2, %c0_3] : memref<8x512xf32, #tpu.memory_space<vmem>>, vector<1x512xf32>
    %2 = vector.shape_cast %1 : vector<1x512xf32> to vector<1x1x512xf32>
    %c1 = arith.constant 1 : index
    %c0_4 = arith.constant 0 : index
    %3 = vector.load %arg1[%c1, %c0_4] : memref<8x512xf32, #tpu.memory_space<vmem>>, vector<1x512xf32>
    %c2 = arith.constant 2 : index
    %c0_5 = arith.constant 0 : index
    %4 = vector.load %arg1[%c2, %c0_5] : memref<8x512xf32, #tpu.memory_space<vmem>>, vector<1x512xf32>
    %5 = vector.broadcast %2 : vector<1x1x512xf32> to vector<2x8x512xf32>
    %6 = arith.mulf %0, %5 : vector<2x8x512xf32>
    %cst = arith.constant dense<0.000000e+00> : vector<2x8xf32>
    %7 = vector.multi_reduction <add>, %6, %cst [2] : vector<2x8x512xf32> to vector<2x8xf32>
    %8 = vector.shape_cast %7 : vector<2x8xf32> to vector<2x8x1xf32>
    %cst_6 = arith.constant dense<0xFF800000> : vector<2x1xf32>
    %9 = vector.multi_reduction <maximumf>, %8, %cst_6 [1] : vector<2x8x1xf32> to vector<2x1xf32>
    %10 = vector.shape_cast %9 : vector<2x1xf32> to vector<2x1x1xf32>
    %11 = vector.broadcast %10 : vector<2x1x1xf32> to vector<2x8x1xf32>
    %12 = arith.subf %8, %11 : vector<2x8x1xf32>
    %13 = math.exp %12 : vector<2x8x1xf32>
    %cst_7 = arith.constant dense<0.000000e+00> : vector<2x1xf32>
    %14 = vector.multi_reduction <add>, %13, %cst_7 [1] : vector<2x8x1xf32> to vector<2x1xf32>
    %15 = vector.broadcast %13 : vector<2x8x1xf32> to vector<2x8x512xf32>
    %16 = arith.mulf %15, %0 : vector<2x8x512xf32>
    %cst_8 = arith.constant dense<0.000000e+00> : vector<2x512xf32>
    %17 = vector.multi_reduction <add>, %16, %cst_8 [1] : vector<2x8x512xf32> to vector<2x512xf32>
    %18 = tpu.reciprocal %14 : vector<2x1xf32> -> vector<2x1xf32>
    %19 = vector.broadcast %18 : vector<2x1xf32> to vector<2x512xf32>
    %20 = arith.mulf %17, %19 : vector<2x512xf32>
    %c0_9 = arith.constant 0 : index
    %c0_10 = arith.constant 0 : index
    %21 = vector.load %arg2[%c0_9, %c0_10] : memref<512x512xf32, #tpu.memory_space<vmem>>, vector<512x512xf32>
    %cst_11 = arith.constant dense<0.000000e+00> : vector<2x512xf32>
    %22 = tpu.matmul %20, %21, %cst_11 {dimension_numbers = #tpu.dot_dimension_numbers<[1], [0], [0], [1], [0, 0, 1, 1], [], []>} : vector<2x512xf32>, vector<512x512xf32>, vector<2x512xf32> -> vector<2x512xf32>
    %cst_12 = arith.constant dense<0.000000e+00> : vector<2xf32>
    %23 = vector.multi_reduction <add>, %22, %cst_12 [1] : vector<2x512xf32> to vector<2xf32>
    %24 = vector.shape_cast %23 : vector<2xf32> to vector<2x1xf32>
    %cst_13 = arith.constant 5.120000e+02 : f32
    %25 = vector.broadcast %cst_13 : f32 to vector<2x1xf32>
    %26 = arith.divf %24, %25 : vector<2x1xf32>
    %27 = vector.broadcast %26 : vector<2x1xf32> to vector<2x512xf32>
    %28 = arith.subf %22, %27 : vector<2x512xf32>
    %29 = arith.mulf %28, %28 : vector<2x512xf32>
    %cst_14 = arith.constant dense<0.000000e+00> : vector<2xf32>
    %30 = vector.multi_reduction <add>, %29, %cst_14 [1] : vector<2x512xf32> to vector<2xf32>
    %31 = vector.shape_cast %30 : vector<2xf32> to vector<2x1xf32>
    %cst_15 = arith.constant 5.120000e+02 : f32
    %32 = vector.broadcast %cst_15 : f32 to vector<2x1xf32>
    %33 = arith.divf %31, %32 : vector<2x1xf32>
    %34 = vector.broadcast %26 : vector<2x1xf32> to vector<2x512xf32>
    %35 = arith.subf %22, %34 : vector<2x512xf32>
    %cst_16 = arith.constant 9.99999997E-7 : f32
    %36 = vector.broadcast %cst_16 : f32 to vector<2x1xf32>
    %37 = arith.addf %33, %36 : vector<2x1xf32>
    %38 = math.rsqrt %37 : vector<2x1xf32>
    %39 = vector.broadcast %38 : vector<2x1xf32> to vector<2x512xf32>
    %40 = arith.mulf %35, %39 : vector<2x512xf32>
    %41 = vector.broadcast %3 : vector<1x512xf32> to vector<2x512xf32>
    %42 = arith.mulf %40, %41 : vector<2x512xf32>
    %43 = vector.broadcast %4 : vector<1x512xf32> to vector<2x512xf32>
    %44 = arith.addf %42, %43 : vector<2x512xf32>
    %c0_17 = arith.constant 0 : index
    %c0_18 = arith.constant 0 : index
    %45 = vector.load %arg4[%c0_17, %c0_18] : memref<2x512xf32, #tpu.memory_space<vmem>>, vector<2x512xf32>
    tpu.vector_store %arg4[%c0_17, %c0_18], %44 {strides = array<i32>} : memref<2x512xf32, #tpu.memory_space<vmem>>, vector<2x512xf32>,
    return
  }
  func.func @transform_0(%arg0: i32) -> (i32, i32) {
    %c0_i32 = arith.constant 0 : i32
    %c0_i32_0 = arith.constant 0 : i32
    %c0_i32_1 = arith.constant 0 : i32
    return %c0_i32, %c0_i32_0 : i32, i32
  }
  func.func @transform_1(%arg0: i32) -> (i32, i32) {
    %c0_i32 = arith.constant 0 : i32
    %c0_i32_0 = arith.constant 0 : i32
    %c0_i32_1 = arith.constant 0 : i32
    return %c0_i32, %c0_i32_0 : i32, i32
  }
  func.func @transform_2(%arg0: i32) -> (i32, i32, i32) {
    %c0_i32 = arith.constant 0 : i32
    %c0_i32_0 = arith.constant 0 : i32
    %c0_i32_1 = arith.constant 0 : i32
    return %arg0, %c0_i32, %c0_i32_0 : i32, i32, i32
  }
  func.func @transform_3(%arg0: i32) -> (i32, i32) {
    %c0_i32 = arith.constant 0 : i32
    %c0_i32_0 = arith.constant 0 : i32
    return %arg0, %c0_i32 : i32, i32
  }
}

</mosaic_0001>

<bundles_post_ra>
// kernel: tpu_custom_call.1
= control target key start
LH: loop header
LB: loop body
LE: loop exit
PB: predicated region body
PF: predicated region fallthrough
CT: control target
= control target key end

     0   :  { %8 = vsyncpa [#allocation3], 0  ;;  %s1105_s0 = inlined_call_operand.hbm [shape: f32[8,512], index: 0, kind: input, shape index: {}]   ;;  %s1106_s1 = inlined_call_operand.hbm [shape: f32[512,512], index: 1, kind: input, shape index: {}]   ;;  %s1107_s2 = inlined_call_operand.hbm [shape: f32[2,8,512], index: 2, kind: input, shape index: {}]   ;;  %s1108_s3 = inlined_call_operand.hbm [shape: f32[2,512], index: 3, kind: output, shape index: {}]  }
   0x1   :  { %9 = vsyncpa [#allocation6], 0 }
   0x2   :  { %10 = vsyncpa [#allocation4], 0  ;;  %s987_s12 = smov [#allocation5]  }
   0x3   :  { %s26_s13 = sshll.u32 %s987_s12, 4  ;;  %s27_s13 = int_to_ptr.vmem [resolvable:$true] %s26_s13 }
   0x4   :  { %s909_s14 = scalar_lea.vmem %s27_s13, 32768  ;;  %p914_p1 = scmp.lt.s32.totalorder %s27_s13, %s27_s13 }
   0x5   :  { %p910_p0 = scmp.ne.s32.totalorder %s27_s13, %s909_s14  ;;  %p915_p2 = scmp.lt.s32.totalorder %s909_s14, %s909_s14 }
   0x7   :  { %p916_p3 = por %p915_p2, %p914_p1 }
   0x9   :  { %p917_p4 = pnand %p916_p3, %p910_p0 }
   0xb   :  { %920 = shalt.err (!%p917_p4)
}
   0xc   :  { %s988_s15 = smov 512   ;;  %s989_s16 = smov 32  }
   0xd   :  { %32 = dma.hbm_to_vmem [thread:$0]  %s1106_s1, 32768, %s27_s13, [#allocation6], %s988_s15, %s988_s15, %s989_s16  }
   0xe   :  { %s990_s19 = smov [#allocation2]   ;;  %s991_s21 = smov [#allocation7]  }
   0xf   :  { %s17_s20 = sshll.u32 %s990_s19, 4  ;;  %s38_s22 = sshll.u32 %s991_s21, 4  ;;  %s18_s20 = int_to_ptr.vmem [resolvable:$true] %s17_s20  ;;  %s39_s22 = int_to_ptr.vmem [resolvable:$true] %s38_s22 }
  0x10   :  { %s929_s23 = scalar_lea.vmem %s18_s20, 512  ;;  %p934_p6 = scmp.lt.s32.totalorder %s18_s20, %s18_s20 }
  0x11   :  { %p930_p5 = scmp.ne.s32.totalorder %s18_s20, %s929_s23  ;;  %p935_p7 = scmp.lt.s32.totalorder %s929_s23, %s929_s23 }
  0x13   :  { %p936_p8 = por %p935_p7, %p934_p6 }
  0x15   :  { %p937_p9 = pnand %p936_p8, %p930_p5 }
  0x17   :  { %940 = shalt.err (!%p937_p9)
}
  0x18   :  { %20 = dma.hbm_to_vmem [thread:$0]  %s1105_s0, 512, %s18_s20, [#allocation3]  }
  0x19   :  { %s949_s26 = scalar_lea.vmem %s39_s22, 1024  ;;  %p954_p11 = scmp.lt.s32.totalorder %s39_s22, %s39_s22 }
  0x1a   :  { %p950_p10 = scmp.ne.s32.totalorder %s39_s22, %s949_s26  ;;  %p955_p12 = scmp.lt.s32.totalorder %s949_s26, %s949_s26 }
  0x1c   :  { %p956_p13 = por %p955_p12, %p954_p11 }
  0x1e   :  { %p957_p0 = pnand %p956_p13, %p950_p10 }
  0x20   :  { %960 = shalt.err (!%p957_p0)
}
  0x21   :  { %44 = dma.hbm_to_vmem [thread:$0]  %s1107_s2, 1024, %s39_s22, [#allocation6], %s988_s15, %s988_s15, %s989_s16  }
  0x22   :  { %981 = dma.done.wait [#allocation3], 512  }
  0x23   :  { %982 = vsyncadd [#allocation3], 4294966784 }
  0x24   :  { %983 = dma.done.wait [#allocation6], 33792  }
  0x25   :  { %984 = vsyncadd [#allocation6], 4294933504  ;;  %v68_v0 = vlaneseq  ;;  %v1037_v6 = vld [vmem:[#allocation7] sm:$0xff]  ;;  %v1039_v7 = vld [vmem:[#allocation7 + $0x8] sm:$0xff]  ;;  %vm466_vm0 = vcmask 1041409   ;;  %vm759_vm1 = vcmask 1041408  }
  0x26   :  { %v1041_v8 = vld [vmem:[#allocation7 + $0x10] sm:$0xff]  ;;  %v1047_v14 = vld [vmem:[#allocation7 + $0x20] sm:$0xff]  ;;  %v1049_v15 = vld [vmem:[#allocation7 + $0x28] sm:$0xff]  ;;  %s993_s0 = smov [#allocation8]  }
  0x27   :  { %v1023_v1 = vshrl.u32 %v68_v0, 7  ;;  %v62_v9 = vld [vmem:[#allocation2] ss:$8 sm:$0xf]  ;;  %s874_s2 = sshll.u32 %s993_s0, 4  ;;  %s875_s2 = int_to_ptr.vmem [resolvable:$true] %s874_s2 }
  0x28   :  { %v1051_v16 = vld [vmem:[#allocation7 + $0x30] sm:$0xff]  ;;  %v1053_v17 = vld [vmem:[#allocation7 + $0x18] sm:$0xff]  ;;  %v263_v18 = vld [vmem:[#allocation5 + $0x1e8] sm:$0xff]  ;;  %s961_s28 = scalar_lea.vmem %s875_s2, 128  ;;  %p966_p2 = scmp.lt.s32.totalorder %s875_s2, %s875_s2 }
  0x29   :  { %v1026_v2 = vsub.s32 0, %v1023_v1  ;;  %v1029_v3 = vsub.s32 1, %v1023_v1  ;;  %v1032_v4 = vsub.s32 2, %v1023_v1  ;;  %v1035_v5 = vsub.s32 3, %v1023_v1  ;;  %v391_v19 = vld [vmem:[#allocation5 + $0x5e8] sm:$0xff]  ;;  %475 = vmatprep.subr.mxu0 %v263_v18  ;;  %v1058_v23 = vld [vmem:[#allocation7 + $0x38] sm:$0xff]  ;;  %p962_p1 = scmp.ne.s32.totalorder %s875_s2, %s961_s28  ;;  %p967_p3 = scmp.lt.s32.totalorder %s961_s28, %s961_s28 }
  0x2a   :  { %546 = vmatprep.subr.mxu1 %v391_v19  ;;  %v262_v35 = vld [vmem:[#allocation5 + $0x1e0] sm:$0xff]  ;;  %v259_v37 = vld [vmem:[#allocation5 + $0x1c8] sm:$0xff] }
  0x2b   :  { %v71_v10 = vrot.slane %v62_v9, %v1026_v2  ;;  %v75_v11 = vrot.slane %v62_v9, %v1029_v3  ;;  %v79_v12 = vrot.slane %v62_v9, %v1032_v4  ;;  %v83_v13 = vrot.slane %v62_v9, %v1035_v5  ;;  %v390_v36 = vld [vmem:[#allocation5 + $0x5e0] sm:$0xff]  ;;  %476 = vmatpush1.msra.mxu0 %v262_v35  ;;  %v387_v38 = vld [vmem:[#allocation5 + $0x5c8] sm:$0xff]  ;;  %p968_p4 = por %p967_p3, %p966_p2 }
  0x2c   :  { %547 = vmatpush1.msra.mxu1 %v390_v36  ;;  %477 = vmatprep.subr.mxu0 %v259_v37  ;;  %v258_v39 = vld [vmem:[#allocation5 + $0x1c0] sm:$0xff]  ;;  %v255_v41 = vld [vmem:[#allocation5 + $0x1a8] sm:$0xff] }
  0x2d   :  { %v88_v20 = vmul.f32 %v71_v10, %v1037_v6  ;;  %v89_v21 = vmul.f32 %v75_v11, %v1039_v7  ;;  %v90_v22 = vmul.f32 %v79_v12, %v1041_v8  ;;  %v92_v24 = vmul.f32 %v71_v10, %v1047_v14  ;;  %548 = vmatprep.subr.mxu1 %v387_v38  ;;  %v386_v40 = vld [vmem:[#allocation5 + $0x5c0] sm:$0xff]  ;;  %v383_v42 = vld [vmem:[#allocation5 + $0x5a8] sm:$0xff]  ;;  %p969_p5 = pnand %p968_p4, %p962_p1 }
  0x2e   :  { %v93_v25 = vmul.f32 %v75_v11, %v1049_v15  ;;  %v94_v26 = vmul.f32 %v79_v12, %v1051_v16  ;;  %v91_v27 = vmul.f32 %v83_v13, %v1053_v17  ;;  %v95_v31 = vmul.f32 %v83_v13, %v1058_v23  ;;  %478 = vmatpush1.msra.mxu0 %v258_v39  ;;  %v254_v43 = vld [vmem:[#allocation5 + $0x1a0] sm:$0xff]  ;;  %v251_v45 = vld [vmem:[#allocation5 + $0x188] sm:$0xff] }
  0x2f   :  { %v96_v28 = vadd.f32 %v89_v21, %v88_v20  ;;  %549 = vmatpush1.msra.mxu1 %v386_v40  ;;  %479 = vmatprep.subr.mxu0 %v255_v41  ;;  %v382_v44 = vld [vmem:[#allocation5 + $0x5a0] sm:$0xff]  ;;  %v379_v46 = vld [vmem:[#allocation5 + $0x588] sm:$0xff] }
  0x30   :  { %v101_v29 = vadd.f32 %v93_v25, %v92_v24  ;;  %550 = vmatprep.subr.mxu1 %v383_v42  ;;  %480 = vmatpush1.msra.mxu0 %v254_v43  ;;  %v250_v47 = vld [vmem:[#allocation5 + $0x180] sm:$0xff]  ;;  %v247_v49 = vld [vmem:[#allocation5 + $0x168] sm:$0xff] }
  0x31   :  { %v97_v30 = vadd.f32 %v96_v28, %v90_v22  ;;  %551 = vmatpush1.msra.mxu1 %v382_v44  ;;  %481 = vmatprep.subr.mxu0 %v251_v45  ;;  %v378_v48 = vld [vmem:[#allocation5 + $0x580] sm:$0xff]  ;;  %v375_v50 = vld [vmem:[#allocation5 + $0x568] sm:$0xff] }
  0x32   :  { %v102_v32 = vadd.f32 %v101_v29, %v94_v26  ;;  %552 = vmatprep.subr.mxu1 %v379_v46  ;;  %482 = vmatpush1.msra.mxu0 %v250_v47  ;;  %v246_v51 = vld [vmem:[#allocation5 + $0x160] sm:$0xff]  ;;  %v243_v53 = vld [vmem:[#allocation5 + $0x148] sm:$0xff] }
  0x33   :  { %v98_v33 = vadd.f32 %v97_v30, %v91_v27  ;;  %553 = vmatpush1.msra.mxu1 %v378_v48  ;;  %483 = vmatprep.subr.mxu0 %v247_v49  ;;  %v374_v52 = vld [vmem:[#allocation5 + $0x560] sm:$0xff]  ;;  %v371_v54 = vld [vmem:[#allocation5 + $0x548] sm:$0xff] }
  0x34   :  { %v103_v34 = vadd.f32 %v102_v32, %v95_v31  ;;  %554 = vmatprep.subr.mxu1 %v375_v50  ;;  %484 = vmatpush1.msra.mxu0 %v246_v51  ;;  %v242_v55 = vld [vmem:[#allocation5 + $0x140] sm:$0xff]  ;;  %v239_v57 = vld [vmem:[#allocation5 + $0x128] sm:$0xff] }
  0x35   :  { %99 = vadd.xlane.f32.xlu0 %v98_v33  ;;  %555 = vmatpush1.msra.mxu1 %v374_v52  ;;  %v370_v56 = vld [vmem:[#allocation5 + $0x540] sm:$0xff]  ;;  %v367_v58 = vld [vmem:[#allocation5 + $0x528] sm:$0xff] }
  0x36   :  { %485 = vmatprep.subr.mxu0 %v243_v53  ;;  %556 = vmatprep.subr.mxu1 %v371_v54  ;;  %v238_v59 = vld [vmem:[#allocation5 + $0x120] sm:$0xff]  ;;  %v235_v61 = vld [vmem:[#allocation5 + $0x108] sm:$0xff] }
  0x37   :  { %486 = vmatpush1.msra.mxu0 %v242_v55  ;;  %557 = vmatpush1.msra.mxu1 %v370_v56  ;;  %v366_v60 = vld [vmem:[#allocation5 + $0x520] sm:$0xff]  ;;  %v363_v62 = vld [vmem:[#allocation5 + $0x508] sm:$0xff] }
  0x38   :  { %487 = vmatprep.subr.mxu0 %v239_v57  ;;  %558 = vmatprep.subr.mxu1 %v367_v58  ;;  %v234_v63 = vld [vmem:[#allocation5 + $0x100] sm:$0xff]  ;;  %v231_v9 = vld [vmem:[#allocation5 + $0xe8] sm:$0xff] }
  0x39   :  { %104 = vadd.xlane.f32.xlu0 %v103_v34  ;;  %488 = vmatpush1.msra.mxu0 %v238_v59  ;;  %v362_v0 = vld [vmem:[#allocation5 + $0x500] sm:$0xff]  ;;  %v359_v10 = vld [vmem:[#allocation5 + $0x4e8] sm:$0xff] }
  0x3a   :  { %559 = vmatpush1.msra.mxu1 %v366_v60  ;;  %489 = vmatprep.subr.mxu0 %v235_v61  ;;  %v230_v11 = vld [vmem:[#allocation5 + $0xe0] sm:$0xff]  ;;  %v227_v13 = vld [vmem:[#allocation5 + $0xc8] sm:$0xff] }
  0x3b   :  { %560 = vmatprep.subr.mxu1 %v363_v62  ;;  %490 = vmatpush1.msra.mxu0 %v234_v63  ;;  %v358_v12 = vld [vmem:[#allocation5 + $0x4e0] sm:$0xff]  ;;  %v355_v18 = vld [vmem:[#allocation5 + $0x4c8] sm:$0xff] }
  0x3c   :  { %561 = vmatpush1.msra.mxu1 %v362_v0  ;;  %491 = vmatprep.subr.mxu0 %v231_v9  ;;  %v226_v19 = vld [vmem:[#allocation5 + $0xc0] sm:$0xff]  ;;  %v223_v21 = vld [vmem:[#allocation5 + $0xa8] sm:$0xff] }
  0x3d   :  { %562 = vmatprep.subr.mxu1 %v359_v10  ;;  %492 = vmatpush1.msra.mxu0 %v230_v11  ;;  %v354_v20 = vld [vmem:[#allocation5 + $0x4c0] sm:$0xff]  ;;  %v351_v22 = vld [vmem:[#allocation5 + $0x4a8] sm:$0xff] }
  0x3e   :  { %563 = vmatpush1.msra.mxu1 %v358_v12  ;;  %493 = vmatprep.subr.mxu0 %v227_v13  ;;  %v222_v24 = vld [vmem:[#allocation5 + $0xa0] sm:$0xff]  ;;  %v219_v26 = vld [vmem:[#allocation5 + $0x88] sm:$0xff] }
  0x3f   :  { %564 = vmatprep.subr.mxu1 %v355_v18  ;;  %494 = vmatpush1.msra.mxu0 %v226_v19  ;;  %v350_v25 = vld [vmem:[#allocation5 + $0x4a0] sm:$0xff]  ;;  %v347_v27 = vld [vmem:[#allocation5 + $0x488] sm:$0xff] }
  0x40   :  { %565 = vmatpush1.msra.mxu1 %v354_v20  ;;  %495 = vmatprep.subr.mxu0 %v223_v21  ;;  %v218_v28 = vld [vmem:[#allocation5 + $0x80] sm:$0xff]  ;;  %v215_v30 = vld [vmem:[#allocation5 + $0x68] sm:$0xff] }
  0x41   :  { %566 = vmatprep.subr.mxu1 %v351_v22  ;;  %496 = vmatpush1.msra.mxu0 %v222_v24  ;;  %v346_v29 = vld [vmem:[#allocation5 + $0x480] sm:$0xff]  ;;  %v343_v31 = vld [vmem:[#allocation5 + $0x468] sm:$0xff] }
  0x42   :  { %567 = vmatpush1.msra.mxu1 %v350_v25  ;;  %497 = vmatprep.subr.mxu0 %v219_v26  ;;  %v214_v32 = vld [vmem:[#allocation5 + $0x60] sm:$0xff]  ;;  %v211_v34 = vld [vmem:[#allocation5 + $0x48] sm:$0xff] }
  0x43   :  { %568 = vmatprep.subr.mxu1 %v347_v27  ;;  %498 = vmatpush1.msra.mxu0 %v218_v28  ;;  %v342_v33 = vld [vmem:[#allocation5 + $0x460] sm:$0xff]  ;;  %v339_v35 = vld [vmem:[#allocation5 + $0x448] sm:$0xff] }
  0x44   :  { %569 = vmatpush1.msra.mxu1 %v346_v29  ;;  %499 = vmatprep.subr.mxu0 %v215_v30  ;;  %v210_v36 = vld [vmem:[#allocation5 + $0x40] sm:$0xff]  ;;  %v207_v38 = vld [vmem:[#allocation5 + $0x28] sm:$0xff] }
  0x45   :  { %570 = vmatprep.subr.mxu1 %v343_v31  ;;  %v338_v37 = vld [vmem:[#allocation5 + $0x440] sm:$0xff]  ;;  %500 = vmatpush1.msra.mxu0 %v214_v32  ;;  %v335_v39 = vld [vmem:[#allocation5 + $0x428] sm:$0xff] }
  0x46   :  { %571 = vmatpush1.msra.mxu1 %v342_v33  ;;  %501 = vmatprep.subr.mxu0 %v211_v34  ;;  %v206_v40 = vld [vmem:[#allocation5 + $0x20] sm:$0xff]  ;;  %v203_v42 = vld [vmem:[#allocation5 + $0x8] sm:$0xff] }
  0x47   :  { %572 = vmatprep.subr.mxu1 %v339_v35  ;;  %v334_v41 = vld [vmem:[#allocation5 + $0x420] sm:$0xff]  ;;  %502 = vmatpush1.msra.mxu0 %v210_v36  ;;  %v331_v43 = vld [vmem:[#allocation5 + $0x408] sm:$0xff] }
  0x48   :  { %573 = vmatpush1.msra.mxu1 %v338_v37  ;;  %503 = vmatprep.subr.mxu0 %v207_v38  ;;  %v202_v44 = vld [vmem:[#allocation5] sm:$0xff]  ;;  %v327_v46 = vld [vmem:[#allocation5 + $0x3e8] sm:$0xff] }
  0x49   :  { %574 = vmatprep.subr.mxu1 %v335_v39  ;;  %v330_v45 = vld [vmem:[#allocation5 + $0x400] sm:$0xff]  ;;  %504 = vmatpush1.msra.mxu0 %v206_v40  ;;  %v455_v47 = vld [vmem:[#allocation5 + $0x7e8] sm:$0xff] }
  0x4a   :  { %575 = vmatpush1.msra.mxu1 %v334_v41  ;;  %505 = vmatprep.subr.mxu0 %v203_v42  ;;  %v326_v48 = vld [vmem:[#allocation5 + $0x3e0] sm:$0xff]  ;;  %v323_v50 = vld [vmem:[#allocation5 + $0x3c8] sm:$0xff] }
  0x4b   :  { %576 = vmatprep.subr.mxu1 %v331_v43  ;;  %v454_v49 = vld [vmem:[#allocation5 + $0x7e0] sm:$0xff]  ;;  %506 = vmatpush1.msra.mxu0 %v202_v44  ;;  %v451_v51 = vld [vmem:[#allocation5 + $0x7c8] sm:$0xff] }
  0x4c   :  { %577 = vmatpush1.msra.mxu1 %v330_v45  ;;  %507 = vmatprep.subr.mxu0 %v327_v46  ;;  %v322_v52 = vld [vmem:[#allocation5 + $0x3c0] sm:$0xff]  ;;  %v319_v54 = vld [vmem:[#allocation5 + $0x3a8] sm:$0xff] }
  0x4d   :  { %578 = vmatprep.subr.mxu1 %v455_v47  ;;  %v450_v53 = vld [vmem:[#allocation5 + $0x7c0] sm:$0xff]  ;;  %508 = vmatpush2.msra.mxu0 %v326_v48  ;;  %v447_v55 = vld [vmem:[#allocation5 + $0x7a8] sm:$0xff] }
  0x4e   :  { %579 = vmatpush2.msra.mxu1 %v454_v49  ;;  %509 = vmatprep.subr.mxu0 %v323_v50  ;;  %v318_v56 = vld [vmem:[#allocation5 + $0x3a0] sm:$0xff]  ;;  %v315_v58 = vld [vmem:[#allocation5 + $0x388] sm:$0xff] }
  0x4f   :  { %580 = vmatprep.subr.mxu1 %v451_v51  ;;  %v446_v57 = vld [vmem:[#allocation5 + $0x7a0] sm:$0xff]  ;;  %510 = vmatpush2.msra.mxu0 %v322_v52  ;;  %v443_v59 = vld [vmem:[#allocation5 + $0x788] sm:$0xff] }
  0x50   :  { %581 = vmatpush2.msra.mxu1 %v450_v53  ;;  %511 = vmatprep.subr.mxu0 %v319_v54  ;;  %v314_v60 = vld [vmem:[#allocation5 + $0x380] sm:$0xff]  ;;  %v311_v62 = vld [vmem:[#allocation5 + $0x368] sm:$0xff] }
  0x51   :  { %582 = vmatprep.subr.mxu1 %v447_v55  ;;  %v442_v61 = vld [vmem:[#allocation5 + $0x780] sm:$0xff]  ;;  %512 = vmatpush2.msra.mxu0 %v318_v56  ;;  %v439_v63 = vld [vmem:[#allocation5 + $0x768] sm:$0xff] }
  0x52   :  { %583 = vmatpush2.msra.mxu1 %v446_v57  ;;  %513 = vmatprep.subr.mxu0 %v315_v58  ;;  %v310_v0 = vld [vmem:[#allocation5 + $0x360] sm:$0xff]  ;;  %v307_v10 = vld [vmem:[#allocation5 + $0x348] sm:$0xff] }
  0x53   :  { %584 = vmatprep.subr.mxu1 %v443_v59  ;;  %v438_v9 = vld [vmem:[#allocation5 + $0x760] sm:$0xff]  ;;  %514 = vmatpush2.msra.mxu0 %v314_v60  ;;  %v435_v11 = vld [vmem:[#allocation5 + $0x748] sm:$0xff]  ;;  %v265_v59 = vld [vmem:[#allocation5 + $0x1f8] sm:$0xff] }
  0x54   :  { %585 = vmatpush2.msra.mxu1 %v442_v61  ;;  %515 = vmatprep.subr.mxu0 %v311_v62  ;;  %v306_v12 = vld [vmem:[#allocation5 + $0x340] sm:$0xff]  ;;  %v303_v18 = vld [vmem:[#allocation5 + $0x328] sm:$0xff]  ;;  %v393_v60 = vld [vmem:[#allocation5 + $0x5f8] sm:$0xff] }
  0x55   :  { %586 = vmatprep.subr.mxu1 %v439_v63  ;;  %v434_v13 = vld [vmem:[#allocation5 + $0x740] sm:$0xff]  ;;  %516 = vmatpush2.msra.mxu0 %v310_v0  ;;  %v431_v19 = vld [vmem:[#allocation5 + $0x728] sm:$0xff] }
  0x56   :  { %587 = vmatpush2.msra.mxu1 %v438_v9  ;;  %517 = vmatprep.subr.mxu0 %v307_v10  ;;  %v302_v20 = vld [vmem:[#allocation5 + $0x320] sm:$0xff]  ;;  %v299_v22 = vld [vmem:[#allocation5 + $0x308] sm:$0xff] }
  0x57   :  { %588 = vmatprep.subr.mxu1 %v435_v11  ;;  %v430_v21 = vld [vmem:[#allocation5 + $0x720] sm:$0xff]  ;;  %518 = vmatpush2.msra.mxu0 %v306_v12  ;;  %v427_v24 = vld [vmem:[#allocation5 + $0x708] sm:$0xff] }
  0x58   :  { %589 = vmatpush2.msra.mxu1 %v434_v13  ;;  %519 = vmatprep.subr.mxu0 %v303_v18  ;;  %v298_v25 = vld [vmem:[#allocation5 + $0x300] sm:$0xff]  ;;  %v295_v27 = vld [vmem:[#allocation5 + $0x2e8] sm:$0xff] }
  0x59   :  { %590 = vmatprep.subr.mxu1 %v431_v19  ;;  %v426_v26 = vld [vmem:[#allocation5 + $0x700] sm:$0xff]  ;;  %520 = vmatpush2.msra.mxu0 %v302_v20  ;;  %v423_v28 = vld [vmem:[#allocation5 + $0x6e8] sm:$0xff] }
  0x5a   :  { %591 = vmatpush2.msra.mxu1 %v430_v21  ;;  %521 = vmatprep.subr.mxu0 %v299_v22  ;;  %v294_v29 = vld [vmem:[#allocation5 + $0x2e0] sm:$0xff]  ;;  %v291_v31 = vld [vmem:[#allocation5 + $0x2c8] sm:$0xff] }
  0x5b   :  { %592 = vmatprep.subr.mxu1 %v427_v24  ;;  %v422_v30 = vld [vmem:[#allocation5 + $0x6e0] sm:$0xff]  ;;  %522 = vmatpush2.msra.mxu0 %v298_v25  ;;  %v419_v32 = vld [vmem:[#allocation5 + $0x6c8] sm:$0xff] }
  0x5c   :  { %593 = vmatpush2.msra.mxu1 %v426_v26  ;;  %523 = vmatprep.subr.mxu0 %v295_v27  ;;  %v290_v33 = vld [vmem:[#allocation5 + $0x2c0] sm:$0xff]  ;;  %v287_v35 = vld [vmem:[#allocation5 + $0x2a8] sm:$0xff] }
  0x5d   :  { %594 = vmatprep.subr.mxu1 %v423_v28  ;;  %v418_v34 = vld [vmem:[#allocation5 + $0x6c0] sm:$0xff]  ;;  %524 = vmatpush2.msra.mxu0 %v294_v29  ;;  %v415_v36 = vld [vmem:[#allocation5 + $0x6a8] sm:$0xff] }
  0x5e   :  { %595 = vmatpush2.msra.mxu1 %v422_v30  ;;  %525 = vmatprep.subr.mxu0 %v291_v31  ;;  %v286_v37 = vld [vmem:[#allocation5 + $0x2a0] sm:$0xff]  ;;  %v283_v39 = vld [vmem:[#allocation5 + $0x288] sm:$0xff] }
  0x5f   :  { %596 = vmatprep.subr.mxu1 %v419_v32  ;;  %v414_v38 = vld [vmem:[#allocation5 + $0x6a0] sm:$0xff]  ;;  %526 = vmatpush2.msra.mxu0 %v290_v33  ;;  %v411_v40 = vld [vmem:[#allocation5 + $0x688] sm:$0xff] }
  0x60   :  { %597 = vmatpush2.msra.mxu1 %v418_v34  ;;  %527 = vmatprep.subr.mxu0 %v287_v35  ;;  %v282_v41 = vld [vmem:[#allocation5 + $0x280] sm:$0xff]  ;;  %v279_v43 = vld [vmem:[#allocation5 + $0x268] sm:$0xff] }
  0x61   :  { %598 = vmatprep.subr.mxu1 %v415_v36  ;;  %v410_v42 = vld [vmem:[#allocation5 + $0x680] sm:$0xff]  ;;  %528 = vmatpush2.msra.mxu0 %v286_v37  ;;  %v407_v44 = vld [vmem:[#allocation5 + $0x668] sm:$0xff] }
  0x62   :  { %599 = vmatpush2.msra.mxu1 %v414_v38  ;;  %529 = vmatprep.subr.mxu0 %v283_v39  ;;  %v278_v45 = vld [vmem:[#allocation5 + $0x260] sm:$0xff]  ;;  %v275_v47 = vld [vmem:[#allocation5 + $0x248] sm:$0xff] }
  0x63   :  { %600 = vmatprep.subr.mxu1 %v411_v40  ;;  %v406_v46 = vld [vmem:[#allocation5 + $0x660] sm:$0xff]  ;;  %530 = vmatpush2.msra.mxu0 %v282_v41  ;;  %v403_v48 = vld [vmem:[#allocation5 + $0x648] sm:$0xff] }
  0x64   :  { %601 = vmatpush2.msra.mxu1 %v410_v42  ;;  %531 = vmatprep.subr.mxu0 %v279_v43  ;;  %v274_v49 = vld [vmem:[#allocation5 + $0x240] sm:$0xff]  ;;  %v271_v51 = vld [vmem:[#allocation5 + $0x228] sm:$0xff] }
  0x65   :  { %602 = vmatprep.subr.mxu1 %v407_v44  ;;  %v402_v50 = vld [vmem:[#allocation5 + $0x640] sm:$0xff]  ;;  %532 = vmatpush2.msra.mxu0 %v278_v45  ;;  %v399_v52 = vld [vmem:[#allocation5 + $0x628] sm:$0xff] }
  0x66   :  { %603 = vmatpush2.msra.mxu1 %v406_v46  ;;  %533 = vmatprep.subr.mxu0 %v275_v47  ;;  %v270_v53 = vld [vmem:[#allocation5 + $0x220] sm:$0xff]  ;;  %v267_v55 = vld [vmem:[#allocation5 + $0x208] sm:$0xff] }
  0x67   :  { %604 = vmatprep.subr.mxu1 %v403_v48  ;;  %v398_v54 = vld [vmem:[#allocation5 + $0x620] sm:$0xff]  ;;  %534 = vmatpush2.msra.mxu0 %v274_v49  ;;  %v395_v56 = vld [vmem:[#allocation5 + $0x608] sm:$0xff] }
  0x68   :  { %605 = vmatpush2.msra.mxu1 %v402_v50  ;;  %535 = vmatprep.subr.mxu0 %v271_v51  ;;  %v266_v57 = vld [vmem:[#allocation5 + $0x200] sm:$0xff] }
  0x69   :  { %606 = vmatprep.subr.mxu1 %v399_v52  ;;  %v394_v58 = vld [vmem:[#allocation5 + $0x600] sm:$0xff]  ;;  %536 = vmatpush2.msra.mxu0 %v270_v53 }
  0x6a   :  { %607 = vmatpush2.msra.mxu1 %v398_v54  ;;  %537 = vmatprep.subr.mxu0 %v267_v55 }
  0x6b   :  { %608 = vmatprep.subr.mxu1 %v395_v56  ;;  %538 = vmatpush2.msra.mxu0 %v266_v57 }
  0x6c   :  { %609 = vmatpush2.msra.mxu1 %v394_v58  ;;  %617 = vmatprep.subr.mxu0 %v265_v59 }
  0x6d   :  { %688 = vmatprep.subr.mxu1 %v393_v60 }
  0xbe   :  { %v100_v61 = vpop.xlane.xlu0 %99 }
  0xbf   :  { %v106_v62 = vrot.slane %v100_v61, 4 }
  0xc1   :  { %v107_v63 = vmax.f32 %v100_v61, %v106_v62 }
  0xc2   :  { %v105_v0 = vpop.xlane.xlu0 %104 }
  0xc3   :  { %v108_v9 = vrot.slane %v107_v63, 2  ;;  %v112_v10 = vrot.slane %v105_v0, 4 }
  0xc5   :  { %v109_v11 = vmax.f32 %v107_v63, %v108_v9  ;;  %v113_v12 = vmax.f32 %v105_v0, %v112_v10 }
  0xc7   :  { %v110_v13 = vrot.slane %v109_v11, 1  ;;  %v114_v18 = vrot.slane %v113_v12, 2 }
  0xc9   :  { %v111_v19 = vmax.f32 %v109_v11, %v110_v13  ;;  %v115_v20 = vmax.f32 %v113_v12, %v114_v18 }
  0xcb   :  { %v118_v21 = vsub.f32 %v100_v61, %v111_v19  ;;  %v116_v22 = vrot.slane %v115_v20, 1 }
  0xcd   :  { %v120_v24 = vmul.f32 1.442695, %v118_v21  ;;  %v117_v25 = vmax.f32 %v115_v20, %v116_v22 }
  0xcf   :  { %891 = vpow2.f32 %v120_v24  ;;  %v119_v26 = vsub.f32 %v105_v0, %v117_v25 }
  0xd1   :  { %v122_v27 = vmul.f32 1.442695, %v119_v26 }
  0xd3   :  { %893 = vpow2.f32 %v122_v27 }
  0xdc   :  { %v892_v28 = vpop.eup %891 }
  0xdd   :  { %v124_v29 = vrot.slane %v892_v28, 4  ;;  %v137_v31 = vmul.f32 %v892_v28, %v1039_v7  ;;  %v139_v33 = vmul.f32 %v892_v28, %v1053_v17  ;;  %v136_v34 = vmul.f32 %v892_v28, %v1037_v6 }
  0xde   :  { %v138_v43 = vmul.f32 %v892_v28, %v1041_v8 }
  0xdf   :  { %v125_v30 = vadd.f32 %v892_v28, %v124_v29  ;;  %v150_v42 = vrot.slane %v137_v31, 4  ;;  %v162_v7 = vrot.slane %v139_v33, 4  ;;  %v144_v46 = vrot.slane %v136_v34, 4 }
  0xe0   :  { %v894_v32 = vpop.eup %893 }
  0xe1   :  { %v126_v35 = vrot.slane %v125_v30, 2  ;;  %v130_v36 = vrot.slane %v894_v32, 4  ;;  %v141_v37 = vmul.f32 %v894_v32, %v1049_v15  ;;  %v143_v38 = vmul.f32 %v894_v32, %v1058_v23 }
  0xe2   :  { %v140_v39 = vmul.f32 %v894_v32, %v1047_v14  ;;  %v151_v50 = vadd.f32 %v150_v42, %v137_v31  ;;  %v156_v15 = vrot.slane %v138_v43, 4  ;;  %v163_v23 = vadd.f32 %v162_v7, %v139_v33 }
  0xe3   :  { %v127_v40 = vadd.f32 %v126_v35, %v125_v30  ;;  %v131_v41 = vadd.f32 %v894_v32, %v130_v36  ;;  %v174_v44 = vrot.slane %v141_v37, 4  ;;  %v186_v45 = vrot.slane %v143_v38, 4 }
  0xe4   :  { %v168_v6 = vrot.slane %v140_v39, 4  ;;  %v145_v14 = vadd.f32 %v144_v46, %v136_v34  ;;  %v152_v8 = vrot.slane %v151_v50, 2  ;;  %v142_v56 = vmul.f32 %v894_v32, %v1051_v16 }
  0xe5   :  { %v128_v17 = vrot.slane %v127_v40, 1  ;;  %v132_v47 = vrot.slane %v131_v41, 2  ;;  %v175_v51 = vadd.f32 %v174_v44, %v141_v37  ;;  %v187_v52 = vadd.f32 %v186_v45, %v143_v38 }
  0xe6   :  { %v169_v54 = vadd.f32 %v168_v6, %v140_v39  ;;  %v157_v57 = vadd.f32 %v156_v15, %v138_v43  ;;  %v164_v59 = vrot.slane %v163_v23, 2  ;;  %v146_v61 = vrot.slane %v145_v14, 2  ;;  %v392_v15 = vld [vmem:[#allocation5 + $0x5f0] sm:$0xff] }
  0xe7   :  { %v129_v48 = vadd.f32 %v128_v17, %v127_v40  ;;  %v133_v49 = vadd.f32 %v132_v47, %v131_v41  ;;  %v176_v58 = vrot.slane %v175_v51, 2  ;;  %v188_v60 = vrot.slane %v187_v52, 2 }
  0xe8   :  { %v170_v62 = vrot.slane %v169_v54, 2  ;;  %v158_v63 = vrot.slane %v157_v57, 2  ;;  %v180_v0 = vrot.slane %v142_v56, 4  ;;  %v153_v10 = vadd.f32 %v152_v8, %v151_v50  ;;  %v264_v50 = vld [vmem:[#allocation5 + $0x1f0] sm:$0xff] }
  0xe9   :  { %v134_v53 = vrot.slane %v133_v49, 1  ;;  %895 = vrcp.f32 %v129_v48  ;;  %v165_v11 = vadd.f32 %v164_v59, %v163_v23  ;;  %v147_v12 = vadd.f32 %v146_v61, %v145_v14  ;;  %v389_v23 = vld [vmem:[#allocation5 + $0x5d8] sm:$0xff]  ;;  %v388_v14 = vld [vmem:[#allocation5 + $0x5d0] sm:$0xff] }
  0xea   :  { %v181_v9 = vadd.f32 %v180_v0, %v142_v56  ;;  %v159_v13 = vadd.f32 %v158_v63, %v157_v57  ;;  %v177_v18 = vadd.f32 %v176_v58, %v175_v51  ;;  %v189_v19 = vadd.f32 %v188_v60, %v187_v52  ;;  %v261_v51 = vld [vmem:[#allocation5 + $0x1d8] sm:$0xff]  ;;  %v260_v52 = vld [vmem:[#allocation5 + $0x1d0] sm:$0xff] }
  0xeb   :  { %v135_v55 = vadd.f32 %v134_v53, %v133_v49  ;;  %v171_v20 = vadd.f32 %v170_v62, %v169_v54  ;;  %v154_v16 = vrot.slane %v153_v10, 1  ;;  %v166_v24 = vrot.slane %v165_v11, 1  ;;  %v257_v53 = vld [vmem:[#allocation5 + $0x1b8] sm:$0xff]  ;;  %v384_v8 = vld [vmem:[#allocation5 + $0x5b0] sm:$0xff] }
  0xec   :  { %v182_v21 = vrot.slane %v181_v9, 2  ;;  %v148_v25 = vrot.slane %v147_v12, 1  ;;  %v160_v26 = vrot.slane %v159_v13, 1  ;;  %v178_v27 = vrot.slane %v177_v18, 1  ;;  %v385_v54 = vld [vmem:[#allocation5 + $0x5b8] sm:$0xff]  ;;  %v252_v58 = vld [vmem:[#allocation5 + $0x190] sm:$0xff] }
  0xed   :  { %897 = vrcp.f32 %v135_v55  ;;  %v190_v28 = vrot.slane %v189_v19, 1  ;;  %v172_v29 = vrot.slane %v171_v20, 1  ;;  %v155_v32 = vadd.f32 %v154_v16, %v153_v10  ;;  %v256_v55 = vld [vmem:[#allocation5 + $0x1b0] sm:$0xff]  ;;  %v253_v56 = vld [vmem:[#allocation5 + $0x198] sm:$0xff] }
  0xee   :  { %v183_v22 = vadd.f32 %v182_v21, %v181_v9  ;;  %v167_v33 = vadd.f32 %v166_v24, %v165_v11  ;;  %v149_v34 = vadd.f32 %v148_v25, %v147_v12  ;;  %v161_v35 = vadd.f32 %v160_v26, %v159_v13  ;;  %v381_v57 = vld [vmem:[#allocation5 + $0x598] sm:$0xff]  ;;  %v380_v59 = vld [vmem:[#allocation5 + $0x590] sm:$0xff] }
  0xef   :  { %v179_v36 = vadd.f32 %v178_v27, %v177_v18  ;;  %v191_v37 = vadd.f32 %v190_v28, %v189_v19  ;;  %v173_v38 = vadd.f32 %v172_v29, %v171_v20  ;;  %v249_v60 = vld [vmem:[#allocation5 + $0x178] sm:$0xff]  ;;  %v248_v62 = vld [vmem:[#allocation5 + $0x170] sm:$0xff] }
  0xf0   :  { %v184_v30 = vrot.slane %v183_v22, 1  ;;  %v377_v61 = vld [vmem:[#allocation5 + $0x578] sm:$0xff]  ;;  %v376_v63 = vld [vmem:[#allocation5 + $0x570] sm:$0xff] }
  0xf1   :  { %v245_v0 = vld [vmem:[#allocation5 + $0x158] sm:$0xff]  ;;  %v244_v10 = vld [vmem:[#allocation5 + $0x150] sm:$0xff] }
  0xf2   :  { %v185_v39 = vadd.f32 %v184_v30, %v183_v22  ;;  %v373_v9 = vld [vmem:[#allocation5 + $0x558] sm:$0xff]  ;;  %v372_v11 = vld [vmem:[#allocation5 + $0x550] sm:$0xff] }
  0xf3   :  { %v241_v12 = vld [vmem:[#allocation5 + $0x138] sm:$0xff]  ;;  %v240_v18 = vld [vmem:[#allocation5 + $0x130] sm:$0xff] }
  0xf4   :  { %v369_v13 = vld [vmem:[#allocation5 + $0x538] sm:$0xff]  ;;  %v368_v19 = vld [vmem:[#allocation5 + $0x530] sm:$0xff] }
  0xf5   :  { %v237_v20 = vld [vmem:[#allocation5 + $0x118] sm:$0xff]  ;;  %v236_v22 = vld [vmem:[#allocation5 + $0x110] sm:$0xff] }
  0xf6   :  { %v896_v31 = vpop.eup %895  ;;  %v365_v21 = vld [vmem:[#allocation5 + $0x518] sm:$0xff]  ;;  %v364_v16 = vld [vmem:[#allocation5 + $0x510] sm:$0xff] }
  0xf7   :  { %v195_v41 = vmul.f32 %v896_v31, %v155_v32  ;;  %v197_v42 = vmul.f32 %v896_v31, %v167_v33  ;;  %v194_v43 = vmul.f32 %v896_v31, %v149_v34  ;;  %v196_v44 = vmul.f32 %v896_v31, %v161_v35  ;;  %v233_v24 = vld [vmem:[#allocation5 + $0xf8] sm:$0xff]  ;;  %v232_v26 = vld [vmem:[#allocation5 + $0xf0] sm:$0xff] }
  0xf8   :  { %v361_v25 = vld [vmem:[#allocation5 + $0x4f8] sm:$0xff]  ;;  %v360_v27 = vld [vmem:[#allocation5 + $0x4f0] sm:$0xff] }
  0xf9   :  { %v229_v28 = vld [vmem:[#allocation5 + $0xd8] sm:$0xff]  ;;  %v228_v30 = vld [vmem:[#allocation5 + $0xd0] sm:$0xff] }
  0xfa   :  { %v898_v40 = vpop.eup %897  ;;  %v357_v29 = vld [vmem:[#allocation5 + $0x4d8] sm:$0xff]  ;;  %v356_v31 = vld [vmem:[#allocation5 + $0x4d0] sm:$0xff] }
  0xfb   :  { %v199_v7 = vmul.f32 %v898_v40, %v179_v36  ;;  %v201_v45 = vmul.f32 %v898_v40, %v191_v37  ;;  %v198_v46 = vmul.f32 %v898_v40, %v173_v38  ;;  %v200_v17 = vmul.f32 %v898_v40, %v185_v39  ;;  %v225_v32 = vld [vmem:[#allocation5 + $0xb8] sm:$0xff]  ;;  %v224_v34 = vld [vmem:[#allocation5 + $0xb0] sm:$0xff] }
  0xfc   :  { %v353_v33 = vld [vmem:[#allocation5 + $0x4b8] sm:$0xff]  ;;  %v352_v35 = vld [vmem:[#allocation5 + $0x4b0] sm:$0xff] }
  0xfd   :  { %v468_v47 = vsel %vm466_vm0, %v199_v7, %v195_v41  ;;  %v470_v6 = vsel %vm466_vm0, %v201_v45, %v197_v42  ;;  %v1076_v48 = vsel %vm466_vm0, %v198_v46, %v194_v43  ;;  %v1079_v49 = vsel %vm466_vm0, %v200_v17, %v196_v44  ;;  %v221_v36 = vld [vmem:[#allocation5 + $0x98] sm:$0xff]  ;;  %v220_v38 = vld [vmem:[#allocation5 + $0x90] sm:$0xff] }
  0xfe   :  { %539 = vmatprep.mubr.f32.mxu0 %v468_v47  ;;  %610 = vmatprep.mubr.f32.mxu1 %v470_v6  ;;  %v349_v37 = vld [vmem:[#allocation5 + $0x498] sm:$0xff]  ;;  %v348_v39 = vld [vmem:[#allocation5 + $0x490] sm:$0xff] }
  0xff   :  { %540 = vmatmul.mubr.f32.vlgmr.msra.gmra.mxu0 %v1076_v48  ;;  %611 = vmatmul.mubr.f32.vlgmr.msra.gmra.mxu1 %v1079_v49  ;;  %v217_v40 = vld [vmem:[#allocation5 + $0x78] sm:$0xff]  ;;  %v216_v42 = vld [vmem:[#allocation5 + $0x70] sm:$0xff] }
 0x100   :  { %618 = vmatpush1.msra.mxu0 %v264_v50  ;;  %689 = vmatpush1.msra.mxu1 %v392_v15  ;;  %v345_v41 = vld [vmem:[#allocation5 + $0x478] sm:$0xff]  ;;  %v344_v43 = vld [vmem:[#allocation5 + $0x470] sm:$0xff] }
 0x101   :  { %619 = vmatprep.subr.mxu0 %v261_v51  ;;  %681 = vmatprep.mubr.f32.mxu0 %v468_v47  ;;  %v213_v44 = vld [vmem:[#allocation5 + $0x58] sm:$0xff]  ;;  %v212_v45 = vld [vmem:[#allocation5 + $0x50] sm:$0xff] }
 0x102   :  { %690 = vmatprep.subr.mxu1 %v389_v23  ;;  %752 = vmatprep.mubr.f32.mxu1 %v470_v6  ;;  %v341_v7 = vld [vmem:[#allocation5 + $0x458] sm:$0xff]  ;;  %v340_v46 = vld [vmem:[#allocation5 + $0x450] sm:$0xff] }
 0x103   :  { %620 = vmatpush1.msra.mxu0 %v260_v52  ;;  %691 = vmatpush1.msra.mxu1 %v388_v14  ;;  %v209_v17 = vld [vmem:[#allocation5 + $0x38] sm:$0xff]  ;;  %v208_v6 = vld [vmem:[#allocation5 + $0x30] sm:$0xff] }
 0x104   :  { %621 = vmatprep.subr.mxu0 %v257_v53  ;;  %692 = vmatprep.subr.mxu1 %v385_v54  ;;  %v337_v47 = vld [vmem:[#allocation5 + $0x438] sm:$0xff]  ;;  %v336_v50 = vld [vmem:[#allocation5 + $0x430] sm:$0xff] }
 0x105   :  { %622 = vmatpush1.msra.mxu0 %v256_v55  ;;  %693 = vmatpush1.msra.mxu1 %v384_v8  ;;  %v205_v15 = vld [vmem:[#allocation5 + $0x18] sm:$0xff]  ;;  %v204_v23 = vld [vmem:[#allocation5 + $0x10] sm:$0xff] }
 0x106   :  { %623 = vmatprep.subr.mxu0 %v253_v56  ;;  %694 = vmatprep.subr.mxu1 %v381_v57  ;;  %v333_v51 = vld [vmem:[#allocation5 + $0x418] sm:$0xff]  ;;  %v332_v52 = vld [vmem:[#allocation5 + $0x410] sm:$0xff] }
 0x107   :  { %624 = vmatpush1.msra.mxu0 %v252_v58  ;;  %695 = vmatpush1.msra.mxu1 %v380_v59  ;;  %v329_v14 = vld [vmem:[#allocation5 + $0x3f8] sm:$0xff]  ;;  %v328_v54 = vld [vmem:[#allocation5 + $0x3f0] sm:$0xff] }
 0x108   :  { %625 = vmatprep.subr.mxu0 %v249_v60  ;;  %696 = vmatprep.subr.mxu1 %v377_v61  ;;  %v457_v53 = vld [vmem:[#allocation5 + $0x7f8] sm:$0xff]  ;;  %v456_v55 = vld [vmem:[#allocation5 + $0x7f0] sm:$0xff] }
 0x109   :  { %626 = vmatpush1.msra.mxu0 %v248_v62  ;;  %697 = vmatpush1.msra.mxu1 %v376_v63  ;;  %v325_v8 = vld [vmem:[#allocation5 + $0x3d8] sm:$0xff]  ;;  %v324_v57 = vld [vmem:[#allocation5 + $0x3d0] sm:$0xff] }
 0x10a   :  { %627 = vmatprep.subr.mxu0 %v245_v0  ;;  %698 = vmatprep.subr.mxu1 %v373_v9  ;;  %v453_v56 = vld [vmem:[#allocation5 + $0x7d8] sm:$0xff]  ;;  %v452_v58 = vld [vmem:[#allocation5 + $0x7d0] sm:$0xff] }
 0x10b   :  { %628 = vmatpush1.msra.mxu0 %v244_v10  ;;  %699 = vmatpush1.msra.mxu1 %v372_v11  ;;  %v321_v59 = vld [vmem:[#allocation5 + $0x3b8] sm:$0xff]  ;;  %v320_v61 = vld [vmem:[#allocation5 + $0x3b0] sm:$0xff] }
 0x10c   :  { %629 = vmatprep.subr.mxu0 %v241_v12  ;;  %700 = vmatprep.subr.mxu1 %v369_v13  ;;  %v449_v60 = vld [vmem:[#allocation5 + $0x7b8] sm:$0xff]  ;;  %v448_v62 = vld [vmem:[#allocation5 + $0x7b0] sm:$0xff] }
 0x10d   :  { %630 = vmatpush1.msra.mxu0 %v240_v18  ;;  %701 = vmatpush1.msra.mxu1 %v368_v19  ;;  %v317_v63 = vld [vmem:[#allocation5 + $0x398] sm:$0xff]  ;;  %v316_v9 = vld [vmem:[#allocation5 + $0x390] sm:$0xff] }
 0x10e   :  { %631 = vmatprep.subr.mxu0 %v237_v20  ;;  %702 = vmatprep.subr.mxu1 %v365_v21  ;;  %v445_v0 = vld [vmem:[#allocation5 + $0x798] sm:$0xff]  ;;  %v444_v10 = vld [vmem:[#allocation5 + $0x790] sm:$0xff] }
 0x10f   :  { %632 = vmatpush1.msra.mxu0 %v236_v22  ;;  %703 = vmatpush1.msra.mxu1 %v364_v16  ;;  %v313_v11 = vld [vmem:[#allocation5 + $0x378] sm:$0xff]  ;;  %v312_v13 = vld [vmem:[#allocation5 + $0x370] sm:$0xff] }
 0x110   :  { %633 = vmatprep.subr.mxu0 %v233_v24  ;;  %704 = vmatprep.subr.mxu1 %v361_v25  ;;  %v441_v12 = vld [vmem:[#allocation5 + $0x778] sm:$0xff]  ;;  %v440_v18 = vld [vmem:[#allocation5 + $0x770] sm:$0xff] }
 0x111   :  { %634 = vmatpush1.msra.mxu0 %v232_v26  ;;  %705 = vmatpush1.msra.mxu1 %v360_v27  ;;  %v309_v19 = vld [vmem:[#allocation5 + $0x358] sm:$0xff]  ;;  %v308_v21 = vld [vmem:[#allocation5 + $0x350] sm:$0xff] }
 0x112   :  { %635 = vmatprep.subr.mxu0 %v229_v28  ;;  %706 = vmatprep.subr.mxu1 %v357_v29  ;;  %v437_v20 = vld [vmem:[#allocation5 + $0x758] sm:$0xff]  ;;  %v436_v22 = vld [vmem:[#allocation5 + $0x750] sm:$0xff] }
 0x113   :  { %636 = vmatpush1.msra.mxu0 %v228_v30  ;;  %707 = vmatpush1.msra.mxu1 %v356_v31  ;;  %v305_v16 = vld [vmem:[#allocation5 + $0x338] sm:$0xff]  ;;  %v304_v25 = vld [vmem:[#allocation5 + $0x330] sm:$0xff] }
 0x114   :  { %637 = vmatprep.subr.mxu0 %v225_v32  ;;  %708 = vmatprep.subr.mxu1 %v353_v33  ;;  %v433_v24 = vld [vmem:[#allocation5 + $0x738] sm:$0xff]  ;;  %v432_v26 = vld [vmem:[#allocation5 + $0x730] sm:$0xff] }
 0x115   :  { %638 = vmatpush1.msra.mxu0 %v224_v34  ;;  %709 = vmatpush1.msra.mxu1 %v352_v35  ;;  %v301_v27 = vld [vmem:[#allocation5 + $0x318] sm:$0xff]  ;;  %v300_v29 = vld [vmem:[#allocation5 + $0x310] sm:$0xff] }
 0x116   :  { %639 = vmatprep.subr.mxu0 %v221_v36  ;;  %710 = vmatprep.subr.mxu1 %v349_v37  ;;  %v429_v28 = vld [vmem:[#allocation5 + $0x718] sm:$0xff]  ;;  %v428_v30 = vld [vmem:[#allocation5 + $0x710] sm:$0xff] }
 0x117   :  { %640 = vmatpush1.msra.mxu0 %v220_v38  ;;  %711 = vmatpush1.msra.mxu1 %v348_v39  ;;  %v297_v31 = vld [vmem:[#allocation5 + $0x2f8] sm:$0xff]  ;;  %v296_v33 = vld [vmem:[#allocation5 + $0x2f0] sm:$0xff] }
 0x118   :  { %641 = vmatprep.subr.mxu0 %v217_v40  ;;  %712 = vmatprep.subr.mxu1 %v345_v41  ;;  %v425_v32 = vld [vmem:[#allocation5 + $0x6f8] sm:$0xff]  ;;  %v424_v34 = vld [vmem:[#allocation5 + $0x6f0] sm:$0xff] }
 0x119   :  { %642 = vmatpush1.msra.mxu0 %v216_v42  ;;  %713 = vmatpush1.msra.mxu1 %v344_v43  ;;  %v293_v35 = vld [vmem:[#allocation5 + $0x2d8] sm:$0xff]  ;;  %v292_v37 = vld [vmem:[#allocation5 + $0x2d0] sm:$0xff] }
 0x11a   :  { %643 = vmatprep.subr.mxu0 %v213_v44  ;;  %714 = vmatprep.subr.mxu1 %v341_v7  ;;  %v421_v36 = vld [vmem:[#allocation5 + $0x6d8] sm:$0xff]  ;;  %v420_v38 = vld [vmem:[#allocation5 + $0x6d0] sm:$0xff] }
 0x11b   :  { %644 = vmatpush1.msra.mxu0 %v212_v45  ;;  %715 = vmatpush1.msra.mxu1 %v340_v46  ;;  %v289_v39 = vld [vmem:[#allocation5 + $0x2b8] sm:$0xff]  ;;  %v288_v41 = vld [vmem:[#allocation5 + $0x2b0] sm:$0xff] }
 0x11c   :  { %645 = vmatprep.subr.mxu0 %v209_v17  ;;  %716 = vmatprep.subr.mxu1 %v337_v47  ;;  %v417_v40 = vld [vmem:[#allocation5 + $0x6b8] sm:$0xff]  ;;  %v416_v42 = vld [vmem:[#allocation5 + $0x6b0] sm:$0xff] }
 0x11d   :  { %646 = vmatpush1.msra.mxu0 %v208_v6  ;;  %717 = vmatpush1.msra.mxu1 %v336_v50  ;;  %v285_v43 = vld [vmem:[#allocation5 + $0x298] sm:$0xff]  ;;  %v284_v7 = vld [vmem:[#allocation5 + $0x290] sm:$0xff] }
 0x11e   :  { %647 = vmatprep.subr.mxu0 %v205_v15  ;;  %718 = vmatprep.subr.mxu1 %v333_v51  ;;  %v413_v44 = vld [vmem:[#allocation5 + $0x698] sm:$0xff]  ;;  %v412_v45 = vld [vmem:[#allocation5 + $0x690] sm:$0xff] }
 0x11f   :  { %648 = vmatpush1.msra.mxu0 %v204_v23  ;;  %719 = vmatpush1.msra.mxu1 %v332_v52  ;;  %v281_v46 = vld [vmem:[#allocation5 + $0x278] sm:$0xff]  ;;  %v280_v47 = vld [vmem:[#allocation5 + $0x270] sm:$0xff] }
 0x120   :  { %649 = vmatprep.subr.mxu0 %v329_v14  ;;  %720 = vmatprep.subr.mxu1 %v457_v53  ;;  %v409_v17 = vld [vmem:[#allocation5 + $0x678] sm:$0xff]  ;;  %v408_v6 = vld [vmem:[#allocation5 + $0x670] sm:$0xff] }
 0x121   :  { %650 = vmatpush2.msra.mxu0 %v328_v54  ;;  %721 = vmatpush2.msra.mxu1 %v456_v55  ;;  %v277_v50 = vld [vmem:[#allocation5 + $0x258] sm:$0xff]  ;;  %v276_v51 = vld [vmem:[#allocation5 + $0x250] sm:$0xff] }
 0x122   :  { %651 = vmatprep.subr.mxu0 %v325_v8  ;;  %722 = vmatprep.subr.mxu1 %v453_v56  ;;  %v405_v15 = vld [vmem:[#allocation5 + $0x658] sm:$0xff]  ;;  %v404_v23 = vld [vmem:[#allocation5 + $0x650] sm:$0xff] }
 0x123   :  { %652 = vmatpush2.msra.mxu0 %v324_v57  ;;  %723 = vmatpush2.msra.mxu1 %v452_v58  ;;  %v273_v52 = vld [vmem:[#allocation5 + $0x238] sm:$0xff]  ;;  %v272_v53 = vld [vmem:[#allocation5 + $0x230] sm:$0xff] }
 0x124   :  { %653 = vmatprep.subr.mxu0 %v321_v59  ;;  %724 = vmatprep.subr.mxu1 %v449_v60  ;;  %v401_v14 = vld [vmem:[#allocation5 + $0x638] sm:$0xff]  ;;  %v400_v54 = vld [vmem:[#allocation5 + $0x630] sm:$0xff] }
 0x125   :  { %654 = vmatpush2.msra.mxu0 %v320_v61  ;;  %725 = vmatpush2.msra.mxu1 %v448_v62  ;;  %v269_v55 = vld [vmem:[#allocation5 + $0x218] sm:$0xff]  ;;  %v268_v56 = vld [vmem:[#allocation5 + $0x210] sm:$0xff] }
 0x126   :  { %655 = vmatprep.subr.mxu0 %v317_v63  ;;  %726 = vmatprep.subr.mxu1 %v445_v0  ;;  %v397_v8 = vld [vmem:[#allocation5 + $0x618] sm:$0xff]  ;;  %v396_v57 = vld [vmem:[#allocation5 + $0x610] sm:$0xff] }
 0x127   :  { %656 = vmatpush2.msra.mxu0 %v316_v9  ;;  %727 = vmatpush2.msra.mxu1 %v444_v10 }
 0x128   :  { %657 = vmatprep.subr.mxu0 %v313_v11  ;;  %728 = vmatprep.subr.mxu1 %v441_v12 }
 0x129   :  { %658 = vmatpush2.msra.mxu0 %v312_v13  ;;  %729 = vmatpush2.msra.mxu1 %v440_v18 }
 0x12a   :  { %659 = vmatprep.subr.mxu0 %v309_v19  ;;  %730 = vmatprep.subr.mxu1 %v437_v20 }
 0x12b   :  { %660 = vmatpush2.msra.mxu0 %v308_v21  ;;  %731 = vmatpush2.msra.mxu1 %v436_v22 }
 0x12c   :  { %661 = vmatprep.subr.mxu0 %v305_v16  ;;  %732 = vmatprep.subr.mxu1 %v433_v24 }
 0x12d   :  { %662 = vmatpush2.msra.mxu0 %v304_v25  ;;  %733 = vmatpush2.msra.mxu1 %v432_v26 }
 0x12e   :  { %663 = vmatprep.subr.mxu0 %v301_v27  ;;  %734 = vmatprep.subr.mxu1 %v429_v28 }
 0x12f   :  { %664 = vmatpush2.msra.mxu0 %v300_v29  ;;  %735 = vmatpush2.msra.mxu1 %v428_v30 }
 0x130   :  { %665 = vmatprep.subr.mxu0 %v297_v31  ;;  %736 = vmatprep.subr.mxu1 %v425_v32 }
 0x131   :  { %666 = vmatpush2.msra.mxu0 %v296_v33  ;;  %737 = vmatpush2.msra.mxu1 %v424_v34 }
 0x132   :  { %667 = vmatprep.subr.mxu0 %v293_v35  ;;  %738 = vmatprep.subr.mxu1 %v421_v36 }
 0x133   :  { %668 = vmatpush2.msra.mxu0 %v292_v37  ;;  %739 = vmatpush2.msra.mxu1 %v420_v38 }
 0x134   :  { %669 = vmatprep.subr.mxu0 %v289_v39  ;;  %740 = vmatprep.subr.mxu1 %v417_v40 }
 0x135   :  { %670 = vmatpush2.msra.mxu0 %v288_v41  ;;  %741 = vmatpush2.msra.mxu1 %v416_v42 }
 0x136   :  { %671 = vmatprep.subr.mxu0 %v285_v43  ;;  %742 = vmatprep.subr.mxu1 %v413_v44  ;;  %v64_v43 = vld [vmem:[#allocation2 + $0x1] ss:$8 sm:$0xf]  ;;  %v66_v44 = vld [vmem:[#allocation2 + $0x2] ss:$8 sm:$0xf] }
 0x137   :  { %672 = vmatpush2.msra.mxu0 %v284_v7  ;;  %743 = vmatpush2.msra.mxu1 %v412_v45  ;;  %v992_v7 = vmov 1983009808  }
 0x138   :  { %673 = vmatprep.subr.mxu0 %v281_v46  ;;  %744 = vmatprep.subr.mxu1 %v409_v17  ;;  %v852_v45 = vunpack.c.l.s4 %v992_v7  ;;  %v811_v46 = vrot.slane %v64_v43, %v1035_v5  ;;  %v799_v17 = vrot.slane %v64_v43, %v1026_v2 }
 0x139   :  { %674 = vmatpush2.msra.mxu0 %v280_v47  ;;  %745 = vmatpush2.msra.mxu1 %v408_v6  ;;  %v803_v47 = vrot.slane %v64_v43, %v1029_v3  ;;  %v807_v6 = vrot.slane %v64_v43, %v1032_v4 }
 0x13a   :  { %675 = vmatprep.subr.mxu0 %v277_v50  ;;  %746 = vmatprep.subr.mxu1 %v405_v15  ;;  %v824_v50 = vrot.slane %v66_v44, %v1026_v2 }
 0x13b   :  { %676 = vmatpush2.msra.mxu0 %v276_v51  ;;  %747 = vmatpush2.msra.mxu1 %v404_v23  ;;  %v828_v51 = vrot.slane %v66_v44, %v1029_v3  ;;  %v832_v23 = vrot.slane %v66_v44, %v1032_v4 }
 0x13c   :  { %677 = vmatprep.subr.mxu0 %v273_v52  ;;  %748 = vmatprep.subr.mxu1 %v401_v14  ;;  %v836_v52 = vrot.slane %v66_v44, %v1035_v5  ;;  %v853_v14 = vunpack.c.0.s8 %v852_v45 }
 0x13d   :  { %678 = vmatpush2.msra.mxu0 %v272_v53  ;;  %749 = vmatpush2.msra.mxu1 %v400_v54 }
 0x13e   :  { %679 = vmatprep.subr.mxu0 %v269_v55  ;;  %750 = vmatprep.subr.mxu1 %v397_v8 }
 0x13f   :  { %680 = vmatpush2.msra.mxu0 %v268_v56  ;;  %751 = vmatpush2.msra.mxu1 %v396_v57 }
 0x140   :  { %682 = vmatmul.mubr.f32.vlgmr.msra.gmra.mxu0 %v1076_v48  ;;  %753 = vmatmul.mubr.f32.vlgmr.msra.gmra.mxu1 %v1079_v49 }
 0x1bf   :  { %v541_v58 = vpop.f32.mrf.mxu0  ;;  %v612_v59 = vpop.f32.mrf.mxu1 }
 0x1c0   :  { %v613_v63 = vadd.f32 %v612_v59, %v541_v58 }
 0x1c1   :  { %v543_v60 = vpop.f32.mrf.mxu0  ;;  %v614_v61 = vpop.f32.mrf.mxu1 }
 0x1c2   :  { %v615_v62 = vadd.f32 %v614_v61, %v543_v60  ;;  %v760_v11 = vsel %vm759_vm1, %v613_v63, 0.0  ;;  %v856_v60 = vsub.s32 %v853_v14, %v1023_v1 }
 0x1c4   :  { %v761_v0 = vsel %vm759_vm1, %v615_v62, 0.0 }
 0x1c5   :  { %v762_v13 = vadd.f32 %v761_v0, %v760_v11 }
 0x200   :  { %v683_v9 = vpop.f32.mrf.mxu0  ;;  %v754_v10 = vpop.f32.mrf.mxu1 }
 0x201   :  { %v755_v12 = vadd.f32 %v754_v10, %v683_v9 }
 0x202   :  { %v685_v18 = vpop.f32.mrf.mxu0  ;;  %v756_v19 = vpop.f32.mrf.mxu1 }
 0x203   :  { %v763_v48 = vsel %vm759_vm1, %v755_v12, 0.0  ;;  %v757_v49 = vadd.f32 %v756_v19, %v685_v18 }
 0x204   :  { %v764_v20 = vadd.f32 %v763_v48, %v762_v13 }
 0x205   :  { %v765_v21 = vsel %vm759_vm1, %v757_v49, 0.0 }
 0x206   :  { %v766_v22 = vadd.f32 %v765_v21, %v764_v20 }
 0x208   :  { %767 = vadd.xlane.f32.xlu1 %v766_v22 }
 0x291   :  { %v768_v16 = vpop.xlane.xlu1 %767 }
 0x292   :  { %v770_v24 = vmul.f32 0.001953125, %v768_v16 }
 0x294   :  { %v771_v25 = vsub.f32 %v613_v63, %v770_v24  ;;  %v772_v26 = vsub.f32 %v615_v62, %v770_v24  ;;  %v773_v27 = vsub.f32 %v755_v12, %v770_v24  ;;  %v774_v28 = vsub.f32 %v757_v49, %v770_v24 }
 0x296   :  { %v775_v29 = vmul.f32 %v771_v25, %v771_v25  ;;  %v776_v30 = vmul.f32 %v772_v26, %v772_v26  ;;  %v777_v31 = vmul.f32 %v773_v27, %v773_v27  ;;  %v778_v32 = vmul.f32 %v774_v28, %v774_v28 }
 0x298   :  { %v779_v33 = vsel %vm759_vm1, %v775_v29, 0.0  ;;  %v780_v34 = vsel %vm759_vm1, %v776_v30, 0.0  ;;  %v782_v36 = vsel %vm759_vm1, %v777_v31, 0.0  ;;  %v784_v38 = vsel %vm759_vm1, %v778_v32, 0.0 }
 0x299   :  { %v781_v35 = vadd.f32 %v780_v34, %v779_v33 }
 0x29b   :  { %v783_v37 = vadd.f32 %v782_v36, %v781_v35 }
 0x29d   :  { %v785_v39 = vadd.f32 %v784_v38, %v783_v37 }
 0x29f   :  { %786 = vadd.xlane.f32.xlu1 %v785_v39 }
 0x328   :  { %v787_v40 = vpop.xlane.xlu1 %786 }
 0x329   :  { %v788_v41 = vmul.f32 0.001953125, %v787_v40 }
 0x32b   :  { %v789_v42 = vadd.f32 1e-06, %v788_v41 }
 0x32d   :  { %899 = vrsqrt.f32 %v789_v42 }
 0x33a   :  { %v900_v15 = vpop.eup %899 }
 0x33b   :  { %v791_v53 = vmul.f32 %v900_v15, %v771_v25  ;;  %v792_v54 = vmul.f32 %v900_v15, %v772_v26  ;;  %v793_v55 = vmul.f32 %v900_v15, %v773_v27  ;;  %v794_v8 = vmul.f32 %v900_v15, %v774_v28 }
 0x33d   :  { %v816_v56 = vmul.f32 %v799_v17, %v791_v53  ;;  %v817_v57 = vmul.f32 %v803_v47, %v792_v54  ;;  %v818_v58 = vmul.f32 %v807_v6, %v793_v55  ;;  %v819_v59 = vmul.f32 %v811_v46, %v794_v8 }
 0x33f   :  { %v841_v61 = vadd.f32 %v824_v50, %v816_v56  ;;  %v842_v2 = vadd.f32 %v828_v51, %v817_v57  ;;  %v843_v62 = vadd.f32 %v832_v23, %v818_v58  ;;  %v844_v63 = vadd.f32 %v836_v52, %v819_v59 }
 0x341   :  { %v849_v3 = vcombine.low %v841_v61, %v842_v2  ;;  %v850_v0 = vcombine.low %v843_v62, %v844_v63 }
 0x343   :  { %v857_v4 = vrot.slane %v849_v3, %v856_v60  ;;  %v864_v5 = vrot.slane %v850_v0, %v856_v60 }
 0x345   :  { %v865_v9 = vcombine.low %v857_v4, %v864_v5 }
 0x347   :  { %867 = vst [vmem:[#allocation8] sm:$0xff] %v865_v9 }
 0x348   :  { %972 = shalt.err (!%p969_p5)
}
 0x349   :  { %877 = dma.vmem_to_hbm [thread:$0]  %s875_s2, 128, %s1108_s3, [#allocation4]  }
 0x34a   :  { %985 = dma.done.wait [#allocation4], 128  }
 0x34b   :  { %986 = vsyncadd [#allocation4], 4294967168 }
 0x34c   :  { %881 = vsyncpa [#allocation3], 1 }
 0x34d   :  { %882 = vsyncpa [#allocation6], 1 }
 0x34e   :  { %883 = vsyncpa [#allocation4], 1 }

</bundles_post_ra>
